<compile_context>
chip_gen: v7x
topology: tpu7x:2x2x1
jax: 0.10.0
libtpu: 0.0.40
codegen_flags: <defaults>
</compile_context>

<pallas_src>
import jax
import jax.numpy as jnp
from jax.experimental import pallas as pl
from jax.experimental.pallas import tpu as pltpu

EPS = 1e-5
_SUB = 8      # f32 sublane tile
_LANE = 128   # lane tile


def _round_up(x, m):
    return -(-x // m) * m


def _pad2(w, rows, cols):
    r, c = w.shape
    if (r, c) == (rows, cols):
        return w
    return jnp.pad(w, ((0, rows - r), (0, cols - c)))


def _make_kernel(c2p, zcp, L, Lp, TB, first):
    """Build the kernel body with static tiling constants closed over."""
    use_mask = Lp != L
    inv_l = 1.0 / float(L)

    def sigmoid(v):
        # tanh runs on the EUP (its own VLIW slot); avoids a VALU divide.
        return 0.5 * jnp.tanh(0.5 * v) + 0.5

    def inorm_relu(v, mask):
        # InstanceNorm1d (affine=False): per-channel over L, biased variance,
        # eps inside the sqrt.  Centered two-pass moments (matches reference).
        if mask is None:
            mu = jnp.mean(v, axis=-1, keepdims=True)
            d = v - mu
            var = jnp.mean(d * d, axis=-1, keepdims=True)
        else:  # L was zero-padded to Lp: exclude padding from the statistics.
            mu = jnp.sum(v * mask, axis=-1, keepdims=True) * inv_l
            d = v - mu
            var = jnp.sum(d * d * mask, axis=-1, keepdims=True) * inv_l
        return jnp.maximum(d * jax.lax.rsqrt(var + EPS), 0.0)

    def body(xs_ref, wg_ref, bg_ref, wc_ref, wc2y_ref, wc2z_ref, o_ref):
        mask = None
        if use_mask:
            mask = (jax.lax.broadcasted_iota(jnp.int32, (1, Lp), 1)
                    < L).astype(jnp.float32)

        # Hoist all (tiny) weight loads out of the batch loop.
        wg = wg_ref[...]
        bg = bg_ref[...]
        wc0, wc1, wc2, wc3 = wc_ref[0], wc_ref[1], wc_ref[2], wc_ref[3]
        wc2y = wc2y_ref[...]
        wc2z = None if wc2z_ref is None else wc2z_ref[...]

        for b in range(TB):                     # static unroll, TB <= 8
            xb = xs_ref[b]                       # (3*c2p[+zcp], Lp) f32
            x1 = xb[0 * c2p:1 * c2p]
            x2 = xb[1 * c2p:2 * c2p]
            x3 = xb[2 * c2p:3 * c2p]

            # One fused gate matmul: [gx; gh; s1; s2; s3] = Wg @ [x1; x2; x3].
            pre = jnp.dot(wg, xb[:3 * c2p],
                          preferred_element_type=jnp.float32) + bg
            g = sigmoid(pre)                     # (5*c2p, Lp), slices aligned
            gx = g[0 * c2p:1 * c2p]
            gh = g[1 * c2p:2 * c2p]
            s1 = g[2 * c2p:3 * c2p]
            s2 = g[3 * c2p:4 * c2p]
            s3 = g[4 * c2p:5 * c2p]

            y1 = x1 + gx * (x2 - x1) + gh * (x3 - x1)   # (1-gx-gh)x1+gx*x2+gh*x3
            y2 = s1 * x2
            y3 = s2 * x1
            y4 = s3 * x3

            # conv: column-split weight, no in-kernel concat of [y1..y4].
            t = (jnp.dot(wc0, y1, preferred_element_type=jnp.float32)
                 + jnp.dot(wc1, y2, preferred_element_type=jnp.float32)
                 + jnp.dot(wc2, y3, preferred_element_type=jnp.float32)
                 + jnp.dot(wc3, y4, preferred_element_type=jnp.float32))
            t = inorm_relu(t, mask)

            # conv2: y-block plus (optional) z-block, again no concat.
            t2 = jnp.dot(wc2y, t, preferred_element_type=jnp.float32)
            if not first:
                zb = xb[3 * c2p:3 * c2p + zcp]
                t2 = t2 + jnp.dot(wc2z, zb, preferred_element_type=jnp.float32)
            o_ref[b] = inorm_relu(t2, mask)

    if first:
        def kernel(xs_ref, wg_ref, bg_ref, wc_ref, wc2y_ref, o_ref):
            body(xs_ref, wg_ref, bg_ref, wc_ref, wc2y_ref, None, o_ref)
    else:
        def kernel(xs_ref, wg_ref, bg_ref, wc_ref, wc2y_ref, wc2z_ref, o_ref):
            body(xs_ref, wg_ref, bg_ref, wc_ref, wc2y_ref, wc2z_ref, o_ref)
    return kernel


def fusion_pallas(x1, x2, x3, params, z=None):
    """x1, x2, x3: (N, 2*inplace, L) f32; z: (N, inplace, L) when first=False."""
    first = z is None
    N, c2, L = x1.shape
    outplace = params["w_conv"].shape[0]
    zc = 0 if first else z.shape[1]

    c2p = _round_up(c2, _SUB)
    zcp = 0 if first else _round_up(zc, _SUB)
    outp = _round_up(outplace, _SUB)
    Lp = _round_up(L, _LANE)
    c_in = 3 * c2p + zcp
    f32 = jnp.float32

    # ---- block-structured fused gate weight (built once, in XLA) ----
    w_se = params["w_se"].astype(f32)                 # (c2, 2*c2) = [A | B]
    A = _pad2(w_se[:, :c2], c2p, c2p)
    B = _pad2(w_se[:, c2:], c2p, c2p)
    S1 = _pad2(params["w_s1"].astype(f32), c2p, c2p)
    S2 = _pad2(params["w_s2"].astype(f32), c2p, c2p)
    Z = jnp.zeros((c2p, c2p), f32)
    wg = jnp.block([[A, B, Z],
                    [A, Z, B],
                    [S1, Z, Z],
                    [Z, S2, Z],
                    [Z, Z, S2]])                      # (5*c2p, 3*c2p)
    bg = jnp.zeros((5 * c2p, 1), f32)                 # bias only on SE gates
    bg = (bg.at[0:c2, 0].set(params["b_se"])
            .at[c2p:c2p + c2, 0].set(params["b_se"]))

    w_conv = params["w_conv"].astype(f32)             # (outplace, 4*c2)
    wc = jnp.stack([_pad2(w_conv[:, k * c2:(k + 1) * c2], outp, c2p)
                    for k in range(4)])               # (4, outp, c2p)
    w_conv2 = params["w_conv2"].astype(f32)           # (outplace, conv2_in)
    wc2y = _pad2(w_conv2[:, :outplace], outp, outp)
    weights = [wg, bg, wc, wc2y]
    if not first:
        weights.append(_pad2(w_conv2[:, outplace:], outp, zcp))
    wgt_bytes = sum(int(w.size) for w in weights) * 4

    # ---- batch tile: amortize per-grid-step overhead, keep >= 2 steps ----
    def step_bytes(tb):
        acts = tb * (c_in + outp) * Lp * 4 * 2        # double-buffered in/out
        tmps = tb * (12 * c2p + 3 * outp) * Lp * 4    # in-flight temporaries
        return acts + 2 * wgt_bytes + tmps + (2 << 20)

    tb = max(1, min(8, (N + 1) // 2))   # >=2 grid steps when N>=2 (v7x: 2 TCs)
    while tb > 1 and step_bytes(tb) > (40 << 20):
        tb //= 2
    n_pad = _round_up(N, tb)

    # ---- ONE stacked, channel-padded activation input (one DMA per step) ----
    def pad_act(a, cp):
        n, c, l = a.shape
        return jnp.pad(a, ((0, n_pad - n), (0, cp - c), (0, Lp - l)))

    blocks = [pad_act(x1, c2p), pad_act(x2, c2p), pad_act(x3, c2p)]
    if not first:
        blocks.append(pad_act(z, zcp))
    xs = jnp.concatenate(blocks, axis=1)              # (n_pad, c_in, Lp)

    def const_spec(w):
        nd = w.ndim
        return pl.BlockSpec(w.shape, lambda i, _nd=nd: (0,) * _nd)

    # Cap well below the 64 MiB v7x per-TC VMEM; floor at the v6e default.
    vmem_limit = int(min(max(step_bytes(tb), 32 << 20), 48 << 20))

    out = pl.pallas_call(
        _make_kernel(c2p, zcp, L, Lp, tb, first),
        out_shape=jax.ShapeDtypeStruct((n_pad, outp, Lp), jnp.float32),
        grid_spec=pltpu.PrefetchScalarGridSpec(
            num_scalar_prefetch=0,
            grid=(n_pad // tb,),
            in_specs=[pl.BlockSpec((tb, c_in, Lp), lambda i: (i, 0, 0))]
                     + [const_spec(w) for w in weights],
            out_specs=pl.BlockSpec((tb, outp, Lp), lambda i: (i, 0, 0)),
        ),
        compiler_params=pltpu.CompilerParams(
            dimension_semantics=("parallel",),
            vmem_limit_bytes=vmem_limit),
    )(xs, *weights)

    if (n_pad, outp, Lp) != (N, outplace, L):
        out = out[:N, :outplace, :L]
    return out


# --------------------------- pure-JAX reference ----------------------------
def fusion_ref(x1, x2, x3, params, z=None):
    def conv(v, w, b=None):
        y = jnp.einsum("oc,ncl->nol", w, v)
        return y if b is None else y + b[None, :, None]

    def inorm(v):
        mu = jnp.mean(v, axis=-1, keepdims=True)
        var = jnp.mean((v - mu) ** 2, axis=-1, keepdims=True)
        return (v - mu) / jnp.sqrt(var + EPS)

    sig = jax.nn.sigmoid
    x = sig(conv(jnp.concatenate([x1, x2], 1), params["w_se"], params["b_se"]))
    h = sig(conv(jnp.concatenate([x1, x3], 1), params["w_se"], params["b_se"]))
    y1 = (1.0 - x - h) * x1 + x * x2 + h * x3
    y2 = sig(conv(x1, params["w_s1"])) * x2
    y3 = sig(conv(x2, params["w_s2"])) * x1
    y4 = sig(conv(x3, params["w_s2"])) * x3
    y = jnp.concatenate([y1, y2, y3, y4], 1)
    y = jax.nn.relu(inorm(conv(y, params["w_conv"])))
    if z is not None:
        y = jnp.concatenate([y, z], 1)
    y = jax.nn.relu(inorm(conv(y, params["w_conv2"])))
    return y


# ------------------------------- params ------------------------------------
def init_params(key, inplace, outplace, first):
    c2 = 2 * inplace
    conv2_in = outplace if first else outplace + inplace
    ks = jax.random.split(key, 6)
    return {
        # PyTorch Conv1d weight shape is (out, in, 1); stored here as (out, in).
        "w_se":    jax.random.normal(ks[0], (c2, 2 * c2), jnp.float32) * 0.2,
        "b_se":    jax.random.normal(ks[1], (c2,), jnp.float32) * 0.1,
        "w_s1":    jax.random.normal(ks[2], (c2, c2), jnp.float32) * 0.2,
        "w_s2":    jax.random.normal(ks[3], (c2, c2), jnp.float32) * 0.2,
        "w_conv":  jax.random.normal(ks[4], (outplace, 8 * inplace), jnp.float32) * 0.2,
        "w_conv2": jax.random.normal(ks[5], (outplace, conv2_in), jnp.float32) * 0.2,
        # NOTE: convm1/convm2 exist in __init__ but are unused in forward().
    }


if __name__ == "__main__":
    key = jax.random.PRNGKey(0)
    N, L, inplace, outplace = 2, 128, 2, 8
    c2 = 2 * inplace

    k1, k2, k3, kz, kp1, kp2 = jax.random.split(key, 6)
    x1 = jax.random.normal(k1, (N, c2, L), jnp.float32)
    x2 = jax.random.normal(k2, (N, c2, L), jnp.float32)
    x3 = jax.random.normal(k3, (N, c2, L), jnp.float32)

    # --------------------------- first=True ---------------------------
    params_t = init_params(kp1, inplace, outplace, first=True)
    out_t = jax.block_until_ready(fusion_pallas(x1, x2, x3, params_t))
    ref_t = fusion_ref(x1, x2, x3, params_t)
    assert out_t.shape == (N, outplace, L)
    assert jnp.allclose(out_t, ref_t, atol=1e-3, rtol=1e-3), \
        float(jnp.max(jnp.abs(out_t - ref_t)))

    # --------------------------- first=False --------------------------
    params_f = init_params(kp2, inplace, outplace, first=False)
    z = jax.random.normal(kz, (N, inplace, L), jnp.float32)
    out_f = jax.block_until_ready(fusion_pallas(x1, x2, x3, params_f, z=z))
    ref_f = fusion_ref(x1, x2, x3, params_f, z=z)
    assert out_f.shape == (N, outplace, L)
    assert jnp.allclose(out_f, ref_f, atol=1e-3, rtol=1e-3), \
        float(jnp.max(jnp.abs(out_f - ref_f)))

    # -------- ragged L (exercises the L-padding + masked-norm path) --------
    Ls = 96
    out_r = jax.block_until_ready(
        fusion_pallas(x1[..., :Ls], x2[..., :Ls], x3[..., :Ls],
                      params_f, z=z[..., :Ls]))
    ref_r = fusion_ref(x1[..., :Ls], x2[..., :Ls], x3[..., :Ls],
                       params_f, z=z[..., :Ls])
    assert out_r.shape == (N, outplace, Ls)
    assert jnp.allclose(out_r, ref_r, atol=1e-3, rtol=1e-3), \
        float(jnp.max(jnp.abs(out_r - ref_r)))

    print("KERNEL_OK")
</pallas_src>

<mosaic_0001>
module attributes {stable_mosaic.version = 11 : i64} {
  func.func @kernel(%arg0: i32, %arg1: memref<1x24x128xf32, #tpu.memory_space<vmem>>, %arg2: memref<40x24xf32, #tpu.memory_space<vmem>>, %arg3: memref<40x1xf32, #tpu.memory_space<vmem>>, %arg4: memref<4x8x8xf32, #tpu.memory_space<vmem>>, %arg5: memref<8x8xf32, #tpu.memory_space<vmem>>, %arg6: memref<1x8x128xf32, #tpu.memory_space<vmem>>) attributes {dimension_semantics = [#tpu.dimension_semantics<parallel>], iteration_bounds = array<i64: 2>, scalar_prefetch = 0 : i64, scratch_operands = 0 : i64, tpu.core_type = #tpu.core_type<tc>, window_params = [{transform_indices = @transform_0, window_bounds = array<i64: 1, 24, 128>}, {pipeline_mode = #tpu.pipeline_mode<synchronous>, transform_indices = @transform_1, window_bounds = array<i64: 40, 24>}, {pipeline_mode = #tpu.pipeline_mode<synchronous>, transform_indices = @transform_2, window_bounds = array<i64: 40, 1>}, {pipeline_mode = #tpu.pipeline_mode<synchronous>, transform_indices = @transform_3, window_bounds = array<i64: 4, 8, 8>}, {pipeline_mode = #tpu.pipeline_mode<synchronous>, transform_indices = @transform_4, window_bounds = array<i64: 8, 8>}, {transform_indices = @transform_5, window_bounds = array<i64: 1, 8, 128>}]} {
    %c0 = arith.constant 0 : index
    %c0_0 = arith.constant 0 : index
    %0 = vector.load %arg2[%c0, %c0_0] : memref<40x24xf32, #tpu.memory_space<vmem>>, vector<40x24xf32>
    %c0_1 = arith.constant 0 : index
    %c0_2 = arith.constant 0 : index
    %1 = vector.load %arg3[%c0_1, %c0_2] : memref<40x1xf32, #tpu.memory_space<vmem>>, vector<40x1xf32>
    %c0_3 = arith.constant 0 : index
    %c0_4 = arith.constant 0 : index
    %c0_5 = arith.constant 0 : index
    %2 = vector.load %arg4[%c0_3, %c0_4, %c0_5] : memref<4x8x8xf32, #tpu.memory_space<vmem>>, vector<1x8x8xf32>
    %3 = vector.shape_cast %2 : vector<1x8x8xf32> to vector<8x8xf32>
    %c1 = arith.constant 1 : index
    %c0_6 = arith.constant 0 : index
    %c0_7 = arith.constant 0 : index
    %4 = vector.load %arg4[%c1, %c0_6, %c0_7] : memref<4x8x8xf32, #tpu.memory_space<vmem>>, vector<1x8x8xf32>
    %5 = vector.shape_cast %4 : vector<1x8x8xf32> to vector<8x8xf32>
    %c2 = arith.constant 2 : index
    %c0_8 = arith.constant 0 : index
    %c0_9 = arith.constant 0 : index
    %6 = vector.load %arg4[%c2, %c0_8, %c0_9] : memref<4x8x8xf32, #tpu.memory_space<vmem>>, vector<1x8x8xf32>
    %7 = vector.shape_cast %6 : vector<1x8x8xf32> to vector<8x8xf32>
    %c3 = arith.constant 3 : index
    %c0_10 = arith.constant 0 : index
    %c0_11 = arith.constant 0 : index
    %8 = vector.load %arg4[%c3, %c0_10, %c0_11] : memref<4x8x8xf32, #tpu.memory_space<vmem>>, vector<1x8x8xf32>
    %9 = vector.shape_cast %8 : vector<1x8x8xf32> to vector<8x8xf32>
    %c0_12 = arith.constant 0 : index
    %c0_13 = arith.constant 0 : index
    %10 = vector.load %arg5[%c0_12, %c0_13] : memref<8x8xf32, #tpu.memory_space<vmem>>, vector<8x8xf32>
    %c0_14 = arith.constant 0 : index
    %c0_15 = arith.constant 0 : index
    %c0_16 = arith.constant 0 : index
    %11 = vector.load %arg1[%c0_14, %c0_15, %c0_16] : memref<1x24x128xf32, #tpu.memory_space<vmem>>, vector<1x24x128xf32>
    %12 = vector.shape_cast %11 : vector<1x24x128xf32> to vector<24x128xf32>
    %13 = vector.extract_strided_slice %12 {offsets = [0, 0], sizes = [8, 128], strides = [1, 1]} : vector<24x128xf32> to vector<8x128xf32>
    %14 = vector.extract_strided_slice %12 {offsets = [8, 0], sizes = [8, 128], strides = [1, 1]} : vector<24x128xf32> to vector<8x128xf32>
    %15 = vector.extract_strided_slice %12 {offsets = [16, 0], sizes = [8, 128], strides = [1, 1]} : vector<24x128xf32> to vector<8x128xf32>
    %cst = arith.constant dense<0.000000e+00> : vector<40x128xf32>
    %16 = tpu.matmul %0, %12, %cst {dimension_numbers = #tpu.dot_dimension_numbers<[1], [0], [0], [1], [0, 0, 1, 1], [], []>} : vector<40x24xf32>, vector<24x128xf32>, vector<40x128xf32> -> vector<40x128xf32>
    %17 = vector.broadcast %1 : vector<40x1xf32> to vector<40x128xf32>
    %18 = arith.addf %16, %17 : vector<40x128xf32>
    %cst_17 = arith.constant 5.000000e-01 : f32
    %19 = vector.broadcast %cst_17 : f32 to vector<40x128xf32>
    %20 = arith.mulf %19, %18 : vector<40x128xf32>
    %21 = math.tanh %20 : vector<40x128xf32>
    %cst_18 = arith.constant 5.000000e-01 : f32
    %22 = vector.broadcast %cst_18 : f32 to vector<40x128xf32>
    %23 = arith.mulf %22, %21 : vector<40x128xf32>
    %cst_19 = arith.constant 5.000000e-01 : f32
    %24 = vector.broadcast %cst_19 : f32 to vector<40x128xf32>
    %25 = arith.addf %23, %24 : vector<40x128xf32>
    %26 = vector.extract_strided_slice %25 {offsets = [0, 0], sizes = [8, 128], strides = [1, 1]} : vector<40x128xf32> to vector<8x128xf32>
    %27 = vector.extract_strided_slice %25 {offsets = [8, 0], sizes = [8, 128], strides = [1, 1]} : vector<40x128xf32> to vector<8x128xf32>
    %28 = vector.extract_strided_slice %25 {offsets = [16, 0], sizes = [8, 128], strides = [1, 1]} : vector<40x128xf32> to vector<8x128xf32>
    %29 = vector.extract_strided_slice %25 {offsets = [24, 0], sizes = [8, 128], strides = [1, 1]} : vector<40x128xf32> to vector<8x128xf32>
    %30 = vector.extract_strided_slice %25 {offsets = [32, 0], sizes = [8, 128], strides = [1, 1]} : vector<40x128xf32> to vector<8x128xf32>
    %31 = arith.subf %14, %13 : vector<8x128xf32>
    %32 = arith.mulf %26, %31 : vector<8x128xf32>
    %33 = arith.addf %13, %32 : vector<8x128xf32>
    %34 = arith.subf %15, %13 : vector<8x128xf32>
    %35 = arith.mulf %27, %34 : vector<8x128xf32>
    %36 = arith.addf %33, %35 : vector<8x128xf32>
    %37 = arith.mulf %28, %14 : vector<8x128xf32>
    %38 = arith.mulf %29, %13 : vector<8x128xf32>
    %39 = arith.mulf %30, %15 : vector<8x128xf32>
    %cst_20 = arith.constant dense<0.000000e+00> : vector<8x128xf32>
    %40 = tpu.matmul %3, %36, %cst_20 {dimension_numbers = #tpu.dot_dimension_numbers<[1], [0], [0], [1], [0, 0, 1, 1], [], []>} : vector<8x8xf32>, vector<8x128xf32>, vector<8x128xf32> -> vector<8x128xf32>
    %cst_21 = arith.constant dense<0.000000e+00> : vector<8x128xf32>
    %41 = tpu.matmul %5, %37, %cst_21 {dimension_numbers = #tpu.dot_dimension_numbers<[1], [0], [0], [1], [0, 0, 1, 1], [], []>} : vector<8x8xf32>, vector<8x128xf32>, vector<8x128xf32> -> vector<8x128xf32>
    %42 = arith.addf %40, %41 : vector<8x128xf32>
    %cst_22 = arith.constant dense<0.000000e+00> : vector<8x128xf32>
    %43 = tpu.matmul %7, %38, %cst_22 {dimension_numbers = #tpu.dot_dimension_numbers<[1], [0], [0], [1], [0, 0, 1, 1], [], []>} : vector<8x8xf32>, vector<8x128xf32>, vector<8x128xf32> -> vector<8x128xf32>
    %44 = arith.addf %42, %43 : vector<8x128xf32>
    %cst_23 = arith.constant dense<0.000000e+00> : vector<8x128xf32>
    %45 = tpu.matmul %9, %39, %cst_23 {dimension_numbers = #tpu.dot_dimension_numbers<[1], [0], [0], [1], [0, 0, 1, 1], [], []>} : vector<8x8xf32>, vector<8x128xf32>, vector<8x128xf32> -> vector<8x128xf32>
    %46 = arith.addf %44, %45 : vector<8x128xf32>
    %cst_24 = arith.constant dense<0.000000e+00> : vector<8xf32>
    %47 = vector.multi_reduction <add>, %46, %cst_24 [1] : vector<8x128xf32> to vector<8xf32>
    %48 = vector.shape_cast %47 : vector<8xf32> to vector<8x1xf32>
    %cst_25 = arith.constant 1.280000e+02 : f32
    %49 = vector.broadcast %cst_25 : f32 to vector<8x1xf32>
    %50 = arith.divf %48, %49 : vector<8x1xf32>
    %51 = vector.broadcast %50 : vector<8x1xf32> to vector<8x128xf32>
    %52 = arith.subf %46, %51 : vector<8x128xf32>
    %53 = arith.mulf %52, %52 : vector<8x128xf32>
    %cst_26 = arith.constant dense<0.000000e+00> : vector<8xf32>
    %54 = vector.multi_reduction <add>, %53, %cst_26 [1] : vector<8x128xf32> to vector<8xf32>
    %55 = vector.shape_cast %54 : vector<8xf32> to vector<8x1xf32>
    %cst_27 = arith.constant 1.280000e+02 : f32
    %56 = vector.broadcast %cst_27 : f32 to vector<8x1xf32>
    %57 = arith.divf %55, %56 : vector<8x1xf32>
    %cst_28 = arith.constant 9.99999974E-6 : f32
    %58 = vector.broadcast %cst_28 : f32 to vector<8x1xf32>
    %59 = arith.addf %57, %58 : vector<8x1xf32>
    %60 = math.rsqrt %59 : vector<8x1xf32>
    %61 = vector.broadcast %60 : vector<8x1xf32> to vector<8x128xf32>
    %62 = arith.mulf %52, %61 : vector<8x128xf32>
    %cst_29 = arith.constant 0.000000e+00 : f32
    %63 = vector.broadcast %cst_29 : f32 to vector<8x128xf32>
    %64 = arith.maximumf %62, %63 : vector<8x128xf32>
    %cst_30 = arith.constant dense<0.000000e+00> : vector<8x128xf32>
    %65 = tpu.matmul %10, %64, %cst_30 {dimension_numbers = #tpu.dot_dimension_numbers<[1], [0], [0], [1], [0, 0, 1, 1], [], []>} : vector<8x8xf32>, vector<8x128xf32>, vector<8x128xf32> -> vector<8x128xf32>
    %cst_31 = arith.constant dense<0.000000e+00> : vector<8xf32>
    %66 = vector.multi_reduction <add>, %65, %cst_31 [1] : vector<8x128xf32> to vector<8xf32>
    %67 = vector.shape_cast %66 : vector<8xf32> to vector<8x1xf32>
    %cst_32 = arith.constant 1.280000e+02 : f32
    %68 = vector.broadcast %cst_32 : f32 to vector<8x1xf32>
    %69 = arith.divf %67, %68 : vector<8x1xf32>
    %70 = vector.broadcast %69 : vector<8x1xf32> to vector<8x128xf32>
    %71 = arith.subf %65, %70 : vector<8x128xf32>
    %72 = arith.mulf %71, %71 : vector<8x128xf32>
    %cst_33 = arith.constant dense<0.000000e+00> : vector<8xf32>
    %73 = vector.multi_reduction <add>, %72, %cst_33 [1] : vector<8x128xf32> to vector<8xf32>
    %74 = vector.shape_cast %73 : vector<8xf32> to vector<8x1xf32>
    %cst_34 = arith.constant 1.280000e+02 : f32
    %75 = vector.broadcast %cst_34 : f32 to vector<8x1xf32>
    %76 = arith.divf %74, %75 : vector<8x1xf32>
    %cst_35 = arith.constant 9.99999974E-6 : f32
    %77 = vector.broadcast %cst_35 : f32 to vector<8x1xf32>
    %78 = arith.addf %76, %77 : vector<8x1xf32>
    %79 = math.rsqrt %78 : vector<8x1xf32>
    %80 = vector.broadcast %79 : vector<8x1xf32> to vector<8x128xf32>
    %81 = arith.mulf %71, %80 : vector<8x128xf32>
    %cst_36 = arith.constant 0.000000e+00 : f32
    %82 = vector.broadcast %cst_36 : f32 to vector<8x128xf32>
    %83 = arith.maximumf %81, %82 : vector<8x128xf32>
    %c0_37 = arith.constant 0 : index
    %c0_38 = arith.constant 0 : index
    %c0_39 = arith.constant 0 : index
    %84 = vector.load %arg6[%c0_37, %c0_38, %c0_39] : memref<1x8x128xf32, #tpu.memory_space<vmem>>, vector<1x8x128xf32>
    %85 = vector.shape_cast %84 : vector<1x8x128xf32> to vector<8x128xf32>
    %86 = vector.shape_cast %83 : vector<8x128xf32> to vector<1x8x128xf32>
    tpu.vector_store %arg6[%c0_37, %c0_38, %c0_39], %86 {strides = array<i32>} : memref<1x8x128xf32, #tpu.memory_space<vmem>>, vector<1x8x128xf32>,
    return
  }
  func.func @transform_0(%arg0: i32) -> (i32, i32, i32) {
    %c0_i32 = arith.constant 0 : i32
    %c0_i32_0 = arith.constant 0 : i32
    %c0_i32_1 = arith.constant 0 : i32
    return %arg0, %c0_i32, %c0_i32_0 : i32, i32, i32
  }
  func.func @transform_1(%arg0: i32) -> (i32, i32) {
    %c0_i32 = arith.constant 0 : i32
    %c0_i32_0 = arith.constant 0 : i32
    %c0_i32_1 = arith.constant 0 : i32
    return %c0_i32, %c0_i32_0 : i32, i32
  }
  func.func @transform_2(%arg0: i32) -> (i32, i32) {
    %c0_i32 = arith.constant 0 : i32
    %c0_i32_0 = arith.constant 0 : i32
    %c0_i32_1 = arith.constant 0 : i32
    return %c0_i32, %c0_i32_0 : i32, i32
  }
  func.func @transform_3(%arg0: i32) -> (i32, i32, i32) {
    %c0_i32 = arith.constant 0 : i32
    %c0_i32_0 = arith.constant 0 : i32
    %c0_i32_1 = arith.constant 0 : i32
    %c0_i32_2 = arith.constant 0 : i32
    return %c0_i32, %c0_i32_0, %c0_i32_1 : i32, i32, i32
  }
  func.func @transform_4(%arg0: i32) -> (i32, i32) {
    %c0_i32 = arith.constant 0 : i32
    %c0_i32_0 = arith.constant 0 : i32
    %c0_i32_1 = arith.constant 0 : i32
    return %c0_i32, %c0_i32_0 : i32, i32
  }
  func.func @transform_5(%arg0: i32) -> (i32, i32, i32) {
    %c0_i32 = arith.constant 0 : i32
    %c0_i32_0 = arith.constant 0 : i32
    %c0_i32_1 = arith.constant 0 : i32
    return %arg0, %c0_i32, %c0_i32_0 : i32, i32, i32
  }
}

</mosaic_0001>

<bundles_post_ra>
// kernel: tpu_custom_call.1
= control target key start
LH: loop header
LB: loop body
LE: loop exit
PB: predicated region body
PF: predicated region fallthrough
CT: control target
= control target key end

     0   :  { %10 = vsyncpa [#allocation3], 0  ;;  %s1319_s0 = inlined_call_operand.vmem [shape: f32[2,24,128], index: 0, kind: input, shape index: {}]   ;;  %s1320_s1 = inlined_call_operand.vmem [shape: f32[40,24], index: 1, kind: input, shape index: {}]   ;;  %s1321_s2 = inlined_call_operand.vmem [shape: f32[40,1], index: 2, kind: input, shape index: {}]   ;;  %s1322_s3 = inlined_call_operand.vmem [shape: f32[4,8,8], index: 3, kind: input, shape index: {}]   ;;  %s1323_s4 = inlined_call_operand.vmem [shape: f32[8,8], index: 4, kind: input, shape index: {}]   ;;  %s1324_s5 = inlined_call_operand.hbm [shape: f32[2,8,128], index: 5, kind: output, shape index: {}]  }
   0x1   :  { %12 = vsyncpa [#allocation3 + $0x1], 0  ;;  %s1126_s18 = smov 0   ;;  %s1128_s19 = smov 0  }
   0x2   :  { %s1130_s20 = smov 0   ;;  %s1132_s21 = smov 0  }
   0x3 LB: > { %s1147_s22 = sadd.s32 4294967295, %s1089_s21   ;;  %s871_s23 = sadd.s32 4294967294, %s1089_s21   ;;  %s1089_s21 = sphi %s1132_s21, %s1330_s21   ;;  %s1085_s20 = sphi %s1130_s20, %s1329_s20   ;;  %s1081_s19 = sphi %s1128_s19, %s1328_s19   ;;  %s1077_s18 = sphi %s1126_s18, %s1327_s18  }
   0x4   : > { %s1151_s24 = sadd.s32 1, %s1089_s21   ;;  %s135_s25 = sadd.s32 1, %s1085_s20 }
   0x5   : > { %s132_s26 = ssub.s32 %s1089_s21, %s1151_s24  ;;  %p145_p0 = scmp.ne.s32.totalorder %s1085_s20, %s1081_s19 }
   0x6   : > { %p133_p1 = scmp.eq.s32.totalorder %s132_s26, 0  ;;  %p146_p2 = scmp.eq.s32.totalorder %s1147_s22, 1 }
   0x7   : > { %p151_p3 = scmp.ne.s32.totalorder %s1081_s19, %s1077_s18  ;;  %p152_p4 = scmp.eq.s32.totalorder %s871_s23, 1 }
   0x8   : > { %s1162_s27 = scalar_select %p133_p1, %s1085_s20, %s135_s25  }
   0x9   : > { %p1164_p5 = por %p146_p2, %p145_p0  ;;  %p1168_p6 = por %p152_p4, %p151_p3 }
   0xa   : > { %p874_p7 = scmp.ge.s32.totalorder %s1089_s21, 1  ;;  %p190_p8 = scmp.lt.s32.totalorder %s1089_s21, 3 }
   0xc   : > { %p191_p9 = pnand %p874_p7, %p190_p8 }
   0xd   : > { %p218_p10 = scmp.lt.s32.totalorder (!%p191_p9), %s1147_s22, 1  ;;  %v1091_v0 = vmov (!%p191_p9), 0.0|0.0   ;;  %vm1092_vm0 = vmmov (!%p191_p9), 0   ;;  %v1093_v1 = vmov (!%p191_p9), 0.0   ;;  %v1094_v2 = vmov (!%p191_p9), 0   ;;  %v230_v3 = vld [vmem:[%s1321_s2 + $0x10] sm:$0xff] (!%p191_p9) }
   0xe   : > { %194 = sbr.rel (%p191_p9) target bundleno = 1357 (0x54d), region = 40  ;;  %958 = vmatprep.subr.bf16.mxu0 (!%p191_p9), %v1091_v0  ;;  %918 = vmatprep.mubr.msk.f32.mxu0 (!%p191_p9), %vm1092_vm0, %v1093_v1  ;;  %v229_v4 = vld [vmem:[%s1321_s2 + $0x8] sm:$0xff] (!%p191_p9)  ;;  %v228_v5 = vld [vmem:[%s1321_s2] sm:$0xff] (!%p191_p9)  ;;  %v231_v6 = vld [vmem:[%s1321_s2 + $0x18] sm:$0xff] (!%p191_p9)  ;;  %vm269_vm1 = vcmask (!%p191_p9), 195584   ;;  %vm404_vm2 = vcmask (!%p191_p9), 64512  }
   0xf   : > { %1011 = vset.pattern.permute.xlu0 (!%p191_p9), %v1094_v2  ;;  %1012 = vset.pattern.permute.xlu1 (!%p191_p9), %v1094_v2  ;;  %v232_v10 = vld [vmem:[%s1321_s2 + $0x20] sm:$0xff] (!%p191_p9)  ;;  %v224_v13 = vld [vmem:[%s1320_s1 + $0x8] sm:$0xff] (!%p191_p9)  ;;  %v225_v14 = vld [vmem:[%s1320_s1 + $0x10] sm:$0xff] (!%p191_p9)  ;;  %s215_s8 = sand.u32 (!%p191_p9), 1, %s1081_s19  }
  0x10   : > { %256 = vperm.xlu0 (!%p191_p9), %1011, %v230_v3   ;;  %933 = vmatprep.subr.mxu1 (!%p191_p9), %v1093_v1  ;;  %v223_v12 = vld [vmem:[%s1320_s1] sm:$0xff] (!%p191_p9)  ;;  %v226_v15 = vld [vmem:[%s1320_s1 + $0x18] sm:$0xff] (!%p191_p9)  ;;  %v877_v59 = vld [vmem:[%s1322_s3 + $0x8] sm:$0xff] (!%p191_p9)  ;;  %s875_s9 = sshll.u32 (!%p191_p9), %s215_s8, 3  ;;  %s799_s16 = scalar_lea.sflag (!%p191_p9), [#allocation3], %s215_s8 }
  0x11   : > { %251 = vperm.xlu1 (!%p191_p9), %1012, %v229_v4   ;;  %935 = vmatprep.mubr.msk.f32.mxu1 (!%p191_p9), %vm1092_vm0, %v1093_v1  ;;  %v227_v16 = vld [vmem:[%s1320_s1 + $0x20] sm:$0xff] (!%p191_p9)  ;;  %v878_v4 = vld [vmem:[%s1322_s3 + $0x10] sm:$0xff] (!%p191_p9)  ;;  %s217_s11 = scalar_lea.vmem (!%p191_p9), [#allocation2], %s875_s9 }
  0x12   : > { %v233_v63 = vld [vmem:[%s1322_s3] sm:$0xff] (!%p191_p9)  ;;  %s812_s12 = sshll.u32 (!%p191_p9), %s217_s11, 4  ;;  %s1279_s12 = int_to_ptr.vmem [resolvable:$true] %s812_s12 }
  0x14   : > { %246 = vperm.xlu0 (!%p191_p9), %1011, %v228_v5  }
  0x15   : > { %s219_s30 = scalar_select %p218_p10, %s1147_s22, 1  ;;  %261 = vperm.xlu1 %1012, %v231_v6   ;;  %v879_v6 = vld [vmem:[%s1322_s3 + $0x18] sm:$0xff] }
  0x17   : > { %s967_s10 = smul.u32 24, %s219_s30 }
  0x18   : > { %266 = vperm.xlu0 %1011, %v232_v10  }
  0x19   : > { %s222_s17 = scalar_lea.vmem %s1319_s0, %s967_s10  ;;  %s891_s10 = sshll.u32 %s1147_s22, 7 }
  0x1a   : > { %v1196_v7 = vld [vmem:[%s222_s17] sm:$0xff]  ;;  %v1198_v8 = vld [vmem:[%s222_s17 + $0x8] sm:$0xff]  ;;  %v1206_v11 = vld [vmem:[%s222_s17 + $0x10] sm:$0xff]  ;;  %s1277_s15 = scalar_lea.hbm %s1324_s5, %s891_s10  ;;  %s1027_s17 = scalar_lea.vmem %s1279_s12, 128 }
  0x1b   : > { %v959_v9 = vpack.c.bf16 %v1198_v8, %v1196_v7  ;;  %v395_v38 = vsub.f32 %v1198_v8, %v1196_v7  ;;  %v398_v46 = vsub.f32 %v1206_v11, %v1196_v7  ;;  %p1028_p11 = scmp.ne.s32.totalorder %s1279_s12, %s1027_s17  ;;  %s1095_s22 = smov [#allocation2]  }
  0x1c   : > { %s1031_s23 = sshll.u32 %s1095_s22, 4  ;;  %s1032_s23 = int_to_ptr.vmem [resolvable:$false] %s1031_s23 }
  0x1d   : > { %960 = vmatpush3.bf16.msra.mxu0 %v959_v9  ;;  %p1029_p12 = pnand %p1028_p11, %p1164_p5  ;;  %s1033_s25 = scalar_lea.vmem %s1032_s23, 256 }
  0x1e   : > { %916 = vmatprep.subr.mxu0 %v1093_v1  ;;  %p1034_p0 = scmp.lt.s32.totalorder %s1279_s12, %s1032_s23  ;;  %p1035_p1 = scmp.lt.s32.totalorder %s1033_s25, %s1027_s17 }
  0x1f   : > { %p1030_p13 = pneg %p1029_p12 }
  0x20   : > { %p1036_p2 = por %p1035_p1, %p1034_p0 }
  0x21   : > { %917 = vmatpush3.msra.mxu0 %v1206_v11 }
  0x22   : > { %919 = vmatmul.mubr.msk.f32.vlgmr.msra.gmra.mrb[0].mxu0 %vm269_vm1, %v223_v12  ;;  %p1037_p3 = pnand %p1036_p2, %p1030_p13 }
  0x23   : > { %921 = vmatprep.mubr.msk.f32.mxu0 %vm1092_vm0, %v1093_v1 }
  0x26   : > { %922 = vmatmul.mubr.msk.f32.gmra.mrb[2].mxu0 %vm269_vm1, %v224_v13 }
  0x27   : > { %924 = vmatprep.mubr.msk.f32.mxu0 %vm1092_vm0, %v1093_v1 }
  0x2a   : > { %925 = vmatmul.mubr.msk.f32.gmra.mrb[4].mxu0 %vm269_vm1, %v225_v14 }
  0x2b   : > { %927 = vmatprep.mubr.msk.f32.mxu0 %vm1092_vm0, %v1093_v1 }
  0x2e   : > { %928 = vmatmul.mubr.msk.f32.gmra.mrb[6].mxu0 %vm269_vm1, %v226_v15 }
  0x2f   : > { %930 = vmatprep.mubr.msk.f32.mxu0 %vm1092_vm0, %v1093_v1 }
  0x32   : > { %931 = vmatmul.mubr.msk.f32.gmra.mrb[8].mxu0 %vm269_vm1, %v227_v16 }
  0x8f   : > { %v257_v17 = vpop.permute.xlu0 %256 }
  0x90   : > { %v252_v22 = vpop.permute.xlu1 %251 }
  0x93   : > { %v247_v18 = vpop.permute.xlu0 %246 }
  0x94   : > { %v262_v31 = vpop.permute.xlu1 %261 }
  0x97   : > { %v267_v40 = vpop.permute.xlu0 %266 }
  0xf5   : > { %v351_v19 = vpop.f32.mrb[0].mxu0 }
  0xf6   : > { %v352_v20 = vadd.f32 %v351_v19, %v247_v18  ;;  %v920_v21 = vpop.f32.mrb[1].mxu0 }
  0xf8   : > { %v375_v23 = vmul.f32 0.5, %v352_v20 }
  0xf9   : > { %v356_v24 = vpop.f32.mrb[2].mxu0 }
  0xfa   : > { %1013 = vtanh.f32 %v375_v23  ;;  %v357_v25 = vadd.f32 %v356_v24, %v252_v22  ;;  %v923_v26 = vpop.f32.mrb[3].mxu0 }
  0xfc   : > { %v376_v27 = vmul.f32 0.5, %v357_v25 }
  0xfd   : > { %v361_v28 = vpop.f32.mrb[4].mxu0 }
  0xfe   : > { %1015 = vtanh.f32 %v376_v27  ;;  %v362_v29 = vadd.f32 %v361_v28, %v257_v17  ;;  %v926_v30 = vpop.f32.mrb[5].mxu0 }
 0x100   : > { %v377_v32 = vmul.f32 0.5, %v362_v29 }
 0x101   : > { %v366_v33 = vpop.f32.mrb[6].mxu0 }
 0x102   : > { %1017 = vtanh.f32 %v377_v32  ;;  %v367_v34 = vadd.f32 %v366_v33, %v262_v31  ;;  %v929_v35 = vpop.f32.mrb[7].mxu0 }
 0x104   : > { %v1014_v36 = vpop.eup %1013  ;;  %v378_v37 = vmul.f32 0.5, %v367_v34 }
 0x105   : > { %v385_v39 = vmul.f32 0.5, %v1014_v36  ;;  %v371_v41 = vpop.f32.mrb[8].mxu0 }
 0x106   : > { %1019 = vtanh.f32 %v378_v37  ;;  %v372_v42 = vadd.f32 %v371_v41, %v267_v40  ;;  %v932_v43 = vpop.f32.mrb[9].mxu0 }
 0x107   : > { %v390_v44 = vadd.f32 0.5, %v385_v39 }
 0x108   : > { %v1016_v45 = vpop.eup %1015  ;;  %v379_v49 = vmul.f32 0.5, %v372_v42 }
 0x109   : > { %v396_v47 = vmul.f32 %v395_v38, %v390_v44  ;;  %v386_v48 = vmul.f32 0.5, %v1016_v45 }
 0x10a   : > { %1021 = vtanh.f32 %v379_v49 }
 0x10b   : > { %v391_v50 = vadd.f32 0.5, %v386_v48  ;;  %v397_v52 = vadd.f32 %v396_v47, %v1196_v7 }
 0x10c   : > { %v1018_v51 = vpop.eup %1017 }
 0x10d   : > { %v399_v53 = vmul.f32 %v398_v46, %v391_v50  ;;  %v387_v54 = vmul.f32 0.5, %v1018_v51 }
 0x10f   : > { %v392_v55 = vadd.f32 0.5, %v387_v54  ;;  %v400_v56 = vadd.f32 %v399_v53, %v397_v52 }
 0x110   : > { %v1020_v57 = vpop.eup %1019 }
 0x111   : > { %v401_v58 = vmul.f32 %v392_v55, %v1198_v8  ;;  %v388_v60 = vmul.f32 0.5, %v1020_v57 }
 0x113   : > { %934 = vmatpush3.msra.mxu1 %v401_v58  ;;  %v393_v61 = vadd.f32 0.5, %v388_v60 }
 0x114   : > { %936 = vmatmul.mubr.msk.f32.vlgmr.msra.gmra.mrb[0].mxu1 %vm404_vm2, %v877_v59  ;;  %938 = vmatprep.subr.mxu1 %v1093_v1  ;;  %v1022_v62 = vpop.eup %1021 }
 0x115   : > { %939 = vmatpush3.msra.mxu1 %v400_v56  ;;  %940 = vmatprep.mubr.msk.f32.mxu1 %vm1092_vm0, %v1093_v1  ;;  %v402_v0 = vmul.f32 %v393_v61, %v1196_v7  ;;  %v389_v2 = vmul.f32 0.5, %v1022_v62 }
 0x116   : > { %943 = vmatprep.subr.mxu1 %v1093_v1 }
 0x117   : > { %v394_v3 = vadd.f32 0.5, %v389_v2 }
 0x119   : > { %v403_v5 = vmul.f32 %v394_v3, %v1206_v11 }
 0x11c   : > { %941 = vmatmul.mubr.msk.f32.vlgmr.msra.gmra.mrb[0].mxu1 %vm404_vm2, %v233_v63 }
 0x11d   : > { %944 = vmatpush3.msra.mxu1 %v402_v0  ;;  %945 = vmatprep.mubr.msk.f32.mxu1 %vm1092_vm0, %v1093_v1 }
 0x11e   : > { %948 = vmatprep.subr.mxu1 %v1093_v1 }
 0x124   : > { %946 = vmatmul.mubr.msk.f32.vlgmr.msra.gmra.mrb[0].mxu1 %vm404_vm2, %v878_v4 }
 0x125   : > { %949 = vmatpush3.msra.mxu1 %v403_v5  ;;  %950 = vmatprep.mubr.msk.f32.mxu1 %vm1092_vm0, %v1093_v1 }
 0x126   : > { %953 = vmatprep.subr.mxu1 %v1093_v1 }
 0x12c   : > { %951 = vmatmul.mubr.msk.f32.vlgmr.msra.gmra.mrb[0].mxu1 %vm404_vm2, %v879_v6 }
 0x12d   : > { %955 = vmatprep.mubr.msk.f32.mxu1 %vm1092_vm0, %v1093_v1  ;;  %v240_v1 = vld [vmem:[%s1323_s4] sm:$0xff] }
 0x1ff   : > { %v694_v7 = vpop.f32.mrb[0].mxu1 }
 0x200   : > { %699 = vadd.xlane.f32.xlu1 %v694_v7  ;;  %v952_v8 = vpop.f32.mrb[1].mxu1 }
 0x28d   : > { %v700_v9 = vpop.xlane.xlu1 %699 }
 0x28e   : > { %v702_v10 = vmul.f32 0.0078125, %v700_v9 }
 0x290   : > { %v703_v11 = vsub.f32 %v694_v7, %v702_v10 }
 0x292   : > { %v704_v12 = vmul.f32 %v703_v11, %v703_v11 }
 0x294   : > { %705 = vadd.xlane.f32.xlu0 %v704_v12 }
 0x321   : > { %v706_v13 = vpop.xlane.xlu0 %705 }
 0x322   : > { %v707_v14 = vmul.f32 0.0078125, %v706_v13 }
 0x324   : > { %v708_v15 = vadd.f32 1e-05, %v707_v14 }
 0x326   : > { %1023 = vrsqrt.f32 %v708_v15 }
 0x330   : > { %v1024_v16 = vpop.eup %1023 }
 0x331   : > { %v710_v17 = vmul.f32 %v1024_v16, %v703_v11 }
 0x333   : > { %v711_v18 = vmax.f32 %v710_v17, 0.0 }
 0x335   : > { %954 = vmatpush3.msra.mxu1 %v711_v18 }
 0x336   : > { %956 = vmatmul.mubr.msk.f32.vlgmr.msra.gmra.mrb[2].mxu1 %vm404_vm2, %v240_v1 }
 0x409   : > { %v781_v19 = vpop.f32.mrb[2].mxu1 }
 0x40a   : > { %785 = vadd.xlane.f32.xlu0 %v781_v19  ;;  %v957_v20 = vpop.f32.mrb[3].mxu1 }
 0x497   : > { %v786_v21 = vpop.xlane.xlu0 %785 }
 0x498   : > { %v787_v22 = vmul.f32 0.0078125, %v786_v21 }
 0x49a   : > { %v788_v23 = vsub.f32 %v781_v19, %v787_v22 }
 0x49c   : > { %v789_v24 = vmul.f32 %v788_v23, %v788_v23 }
 0x49e   : > { %790 = vadd.xlane.f32.xlu1 %v789_v24 }
 0x52b   : > { %v791_v25 = vpop.xlane.xlu1 %790 }
 0x52c   : > { %v792_v26 = vmul.f32 0.0078125, %v791_v25 }
 0x52e   : > { %v793_v27 = vadd.f32 1e-05, %v792_v26 }
 0x530   : > { %1025 = vrsqrt.f32 %v793_v27 }
 0x53a   : > { %v1026_v28 = vpop.eup %1025 }
 0x53b   : > { %v795_v29 = vmul.f32 %v1026_v28, %v788_v23 }
 0x53d   : > { %v796_v30 = vmax.f32 %v795_v29, 0.0 }
 0x53f   : > { %797 = vst [vmem:[%s217_s11] sm:$0xff] %v796_v30 }
 0x540   : > { %1040 = shalt.err (!%p1037_p3)
}
 0x541   : > { %s1041_s26 = scalar_lea.hbm %s1277_s15, 128  ;;  %s1045_s7 = scalar_lea.hbm %s1324_s5, 256 }
 0x542   : > { %p1042_p4 = scmp.ne.s32.totalorder %s1277_s15, %s1041_s26  ;;  %p1046_p9 = scmp.lt.u32.totalorder %s1277_s15, %s1324_s5 }
 0x543   : > { %p1047_p10 = scmp.lt.u32.totalorder %s1045_s7, %s1041_s26  ;;  %p1049_p12 = scmp.lt.u32.totalorder %s1041_s26, %s1277_s15 }
 0x544   : > { %p1043_p7 = pnand %p1042_p4, %p1164_p5 }
 0x545   : > { %p1048_p11 = por %p1047_p10, %p1046_p9 }
 0x546   : > { %p1044_p8 = pneg %p1043_p7 }
 0x547   : > { %p1050_p13 = por %p1049_p12, %p1048_p11 }
 0x549   : > { %p1051_p0 = pnand %p1050_p13, %p1044_p8 }
 0x54b   : > { %1054 = shalt.err (!%p1051_p0)
}
 0x54c   : > { %968 = dma.vmem_to_hbm [thread:$0]  (%p1164_p5), %s1279_s12, 128, %s1277_s15, %s799_s16  }
 0x54d PF: > { %p974_p1 = scmp.ge.s32.totalorder %s1089_s21, 2  ;;  %s824_s10 = sand.u32 1, %s1077_s18  }
 0x54e   : > { %s825_s11 = scalar_lea.sflag [#allocation3], %s824_s10 }
 0x54f   : > { %p971_p2 = pnand %p974_p1, %p1168_p6 }
 0x551   : > { %1072 = dma.done.wait (!%p971_p2), %s825_s11, 128  }
 0x552   : > { %1074 = vsyncadd (!%p971_p2), %s825_s11, 4294967168  ;;  %p15_p3 = scmp.ge.s32.totalorder %s1151_s24, 4   ;;  %s1327_s18 = smov %s1081_s19 }
 0x553   : > { %s1328_s19 = smov %s1085_s20  ;;  %s1329_s20 = smov %s1162_s27 }
 0x554   : > { %s1330_s21 = smov %s1151_s24  ;;  %17 = sbr.rel (!%p15_p3) target bundleno = 3 (0x3), region = 78 }
 0x55b   :  { %830 = vsyncpa [#allocation3], 1 }
 0x55c   :  { %832 = vsyncpa [#allocation3 + $0x1], 1 }

</bundles_post_ra>
